<compile_context>
chip_gen: v7x
topology: tpu7x:2x2x1
jax: 0.10.0
libtpu: 0.0.40
codegen_flags: <defaults>
</compile_context>

<pallas_src>
import functools
import math

import jax
import jax.numpy as jnp
from jax import lax
from jax.experimental import pallas as pl
from jax.experimental.pallas import tpu as pltpu


_SUPPORTED_ACTIVATIONS = ("linear", "relu", "tanh", "sigmoid", "softmax")
_MIB = 1024 * 1024


def _round_up(a, b):
    return ((a + b - 1) // b) * b


def _sublane(dtype):
    # Sub-32-bit dtypes pack along sublanes: 8 rows (f32), 16 (bf16), 32 (int8/fp8).
    return {4: 8, 2: 16, 1: 32}[jnp.dtype(dtype).itemsize]


def _hw_config():
    """Generation-aware tile bases and VMEM cap (leaves compiler headroom)."""
    try:
        kind = jax.devices()[0].device_kind.lower()
    except Exception:  # pragma: no cover
        kind = ""
    if "v7" in kind:
        # 64 MiB VMEM/TC -> cap well below; 256-aligned N/K tiles for 2x256^2 MXU.
        return dict(tm=1024, tn=512, tk=512, vmem_cap=56 * _MIB)
    if "v6" in kind:
        # 128 MiB VMEM, ~1.4 TB/s HBM: big resident tiles, big tm.
        return dict(tm=1024, tn=512, tk=512, vmem_cap=96 * _MIB)
    # v5e (128 MiB VMEM, ~0.82 TB/s HBM, 4x128^2 MXU) and generic fallback.
    return dict(tm=1024, tn=256, tk=512, vmem_cap=96 * _MIB)


def _divisor_tile(extent_pad, base, unit=128):
    """Largest multiple of `unit` (<= base) dividing extent_pad exactly.

    Guarantees zero padding beyond the 128-rounding of the extent, so no MXU
    work or HBM weight traffic is wasted on awkward K/N sizes.
    """
    best = unit
    for cand in range(unit, min(base, extent_pad) + 1, unit):
        if extent_pad % cand == 0:
            best = cand
    return best


def _balanced_m_tile(m, base, sublane):
    """tm minimizing (#M tiles, padded M).

    Fewer M tiles => less weight re-streaming in the tiled path (the dominant
    HBM traffic term); minimal padding => less wasted x traffic / compute.
    """
    m = max(int(m), 1)
    tiles = -(-m // base)
    return _round_up(-(-m // tiles), sublane)


def _apply_activation(acc, activation, n_valid):
    if activation == "linear":
        return acc
    if activation == "relu":
        return jnp.maximum(acc, 0.0)
    if activation == "tanh":
        return jnp.tanh(acc)
    if activation == "sigmoid":
        return jax.nn.sigmoid(acc)
    if activation == "softmax":
        # Full (padded) output row is resident in this block; mask padded lanes
        # so they contribute nothing to the denominator.
        tn = acc.shape[-1]
        if n_valid < tn:
            lane = lax.broadcasted_iota(jnp.int32, acc.shape, 1)
            acc = jnp.where(lane < n_valid, acc, -jnp.inf)
        return jax.nn.softmax(acc, axis=-1)
    raise ValueError(f"unsupported activation: {activation}")


# ----------------------------------------------------------------------------
# Kernels
# ----------------------------------------------------------------------------
def _linear_resident_kernel(x_ref, wt_ref, b_ref, o_ref, *,
                            activation, n_valid, precision):
    # x_ref: [tm, K_pad], wt_ref: [K_pad, N_pad] (whole weight, resident),
    # b_ref: [1, N_pad], o_ref: [tm, N_pad]
    acc = lax.dot_general(
        x_ref[...], wt_ref[...],
        dimension_numbers=(((1,), (0,)), ((), ())),
        preferred_element_type=jnp.float32,
        precision=precision)
    acc = acc + b_ref[...].astype(jnp.float32)
    acc = _apply_activation(acc, activation, n_valid)
    o_ref[...] = acc.astype(o_ref.dtype)


def _linear_tiled_kernel(x_ref, wt_ref, b_ref, o_ref, acc_ref, *,
                         activation, n_valid, precision):
    # x_ref: [tm, tk], wt_ref: [tk, tn], b_ref: [1, tn], o_ref: [tm, tn]
    k = pl.program_id(2)

    @pl.when(k == 0)
    def _():
        # Fold bias into the accumulator init: removes a tm x tn VPU add (and
        # a sublane broadcast) from the epilogue behind the last MXU drain.
        acc_ref[...] = jnp.zeros_like(acc_ref) + b_ref[...].astype(jnp.float32)

    # Weight was pre-transposed to [K, N] at setup time -> plain (1,0)
    # contraction, no per-tile XLU transpose inside the kernel.
    acc_ref[...] += lax.dot_general(
        x_ref[...], wt_ref[...],
        dimension_numbers=(((1,), (0,)), ((), ())),
        preferred_element_type=jnp.float32,
        precision=precision)

    @pl.when(k == pl.num_programs(2) - 1)
    def _():
        acc = _apply_activation(acc_ref[...], activation, n_valid)
        o_ref[...] = acc.astype(o_ref.dtype)


# ----------------------------------------------------------------------------
# Parameter preparation (do once at setup time)
# ----------------------------------------------------------------------------
def prepare_linear_params(weight, bias=None, *, dtype=None):
    """One-time parameter prep: transpose the PyTorch-layout weight [N, K] to
    [K, N] and zero-pad K/N to multiples of 128 (lane-dense, (8,128)-aligned).

    Doing this at setup time (or under jit, where it constant-folds for
    parameter-constants) avoids a full NxK HBM copy on every forward call.
    """
    n_out, k_in = weight.shape
    if dtype is not None:
        weight = weight.astype(dtype)
    k_pad = _round_up(k_in, 128)
    n_pad = _round_up(n_out, 128)
    w_t = weight.T
    if (k_pad, n_pad) != (k_in, n_out):
        w_t = jnp.pad(w_t, ((0, k_pad - k_in), (0, n_pad - n_out)))
    if bias is None:
        b_row = jnp.zeros((1, n_pad), dtype=weight.dtype)
    else:
        b_row = bias.astype(weight.dtype).reshape(1, n_out)
        if n_pad != n_out:
            b_row = jnp.pad(b_row, ((0, 0), (0, n_pad - n_out)))
    return dict(w_t=w_t, b_row=b_row, n_out=n_out, k_in=k_in)


# ----------------------------------------------------------------------------
# Forward
# ----------------------------------------------------------------------------
def _linear_forward(x, prepared, *, activation, split_out, force_tiled, precision):
    if activation not in _SUPPORTED_ACTIVATIONS:
        raise ValueError(f"unsupported activation: {activation}")

    w_t, b_row = prepared["w_t"], prepared["b_row"]
    n_out, k_in = prepared["n_out"], prepared["k_in"]
    assert x.shape[-1] == k_in

    lead_shape = x.shape[:-1]
    m = int(math.prod(lead_shape)) if lead_shape else 1
    x2d = x.reshape(m, k_in)

    # TODO(synk): in_dropout / out_dropout are identity in eval mode; training
    # dropout (stateful PRNG masks) is not implemented here.

    k_pad, n_pad = w_t.shape
    isz = jnp.dtype(x.dtype).itemsize
    wsz = jnp.dtype(w_t.dtype).itemsize
    osz = isz
    sub = _sublane(x.dtype)
    cfg = _hw_config()
    budget = int(cfg["vmem_cap"] * 0.8)

    kernel_activation = activation
    post_softmax = False

    # --------------------- path selection -----------------------------------
    w_bytes = k_pad * n_pad * wsz

    def resident_footprint(tm_):
        return (2 * w_bytes                      # weight (pipeliner allocs 2 bufs)
                + 2 * n_pad * wsz                # bias
                + 2 * tm_ * k_pad * isz          # x tile (double-buffered)
                + 2 * tm_ * n_pad * osz          # out tile (double-buffered)
                + tm_ * n_pad * 4)               # f32 matmul intermediate

    tm_res = _balanced_m_tile(m, cfg["tm"], sub)
    while resident_footprint(tm_res) > budget and tm_res > sub:
        tm_res = max(sub, _round_up(tm_res // 2, sub))
    use_resident = (not force_tiled) and resident_footprint(tm_res) <= budget

    if use_resident:
        tm = tm_res
        tn, tk = n_pad, k_pad
        m_pad = _round_up(m, tm)
        footprint = resident_footprint(tm)
    else:
        tk = _divisor_tile(k_pad, cfg["tk"])

        def plan(tn_):
            def fp(tm_):
                return (2 * tm_ * tk * isz + 2 * tk * tn_ * wsz + 2 * tn_ * wsz
                        + 2 * tm_ * tn_ * osz + tm_ * tn_ * 4)
            tm_ = _balanced_m_tile(m, cfg["tm"], sub)
            while fp(tm_) > budget and tm_ > sub:
                tm_ = max(sub, _round_up(tm_ // 2, sub))
            return tm_, fp(tm_)

        if activation == "softmax":
            # Softmax needs the whole (padded) output row in one block.
            tn = n_pad
            tm, footprint = plan(tn)
            if footprint > budget:
                # TODO(synk): fused online-softmax (running max/sum across j
                # tiles) for very large output_dims; for now compute the linear
                # part in the kernel and apply softmax outside (still correct).
                kernel_activation = "linear"
                post_softmax = True
                tn = _divisor_tile(n_pad, cfg["tn"])
                tm, footprint = plan(tn)
        else:
            tn = _divisor_tile(n_pad, cfg["tn"])
            tm, footprint = plan(tn)

        m_pad = _round_up(m, tm)

    # --------------------- pad the activation (only) ------------------------
    if (m_pad, k_pad) != (m, k_in):
        x2d = jnp.pad(x2d, ((0, m_pad - m), (0, k_pad - k_in)))

    vmem_limit = int(min(cfg["vmem_cap"], max(32 * _MIB, footprint + 8 * _MIB)))

    # --------------------- cost estimate (actual streamed traffic) ----------
    transcendentals = 0
    if kernel_activation in ("tanh", "sigmoid"):
        transcendentals = m_pad * n_pad
    elif kernel_activation == "softmax":
        transcendentals = 2 * m_pad * n_pad
    if use_resident:
        bytes_accessed = (m_pad * k_pad * isz + k_pad * n_pad * wsz
                          + n_pad * wsz + m_pad * n_pad * osz)
    else:
        m_tiles, n_tiles = m_pad // tm, n_pad // tn
        bytes_accessed = (n_tiles * m_pad * k_pad * isz     # x re-read per N tile
                          + m_tiles * k_pad * n_pad * wsz   # W re-read per M tile
                          + m_tiles * n_tiles * tn * wsz    # bias
                          + m_pad * n_pad * osz)
    cost = pl.CostEstimate(flops=2 * m_pad * k_pad * n_pad,
                           transcendentals=transcendentals,
                           bytes_accessed=int(bytes_accessed))

    # --------------------- launch --------------------------------------------
    if use_resident:
        kernel = functools.partial(_linear_resident_kernel,
                                   activation=kernel_activation,
                                   n_valid=n_out, precision=precision)
        out2d = pl.pallas_call(
            kernel,
            out_shape=jax.ShapeDtypeStruct((m_pad, n_pad), x.dtype),
            grid_spec=pltpu.PrefetchScalarGridSpec(
                num_scalar_prefetch=0,
                grid=(m_pad // tm,),
                in_specs=[
                    pl.BlockSpec((tm, k_pad), lambda i: (i, 0)),
                    # Constant block index -> weight is DMA'd once per call and
                    # stays resident across all M tiles.
                    pl.BlockSpec((k_pad, n_pad), lambda i: (0, 0)),
                    pl.BlockSpec((1, n_pad), lambda i: (0, 0)),
                ],
                out_specs=pl.BlockSpec((tm, n_pad), lambda i: (i, 0)),
            ),
            compiler_params=pltpu.CompilerParams(
                dimension_semantics=("parallel",),
                vmem_limit_bytes=vmem_limit),
            cost_estimate=cost,
        )(x2d, w_t, b_row)
    else:
        kernel = functools.partial(_linear_tiled_kernel,
                                   activation=kernel_activation,
                                   n_valid=n_out, precision=precision)
        grid = (m_pad // tm, n_pad // tn, k_pad // tk)
        out2d = pl.pallas_call(
            kernel,
            out_shape=jax.ShapeDtypeStruct((m_pad, n_pad), x.dtype),
            grid_spec=pltpu.PrefetchScalarGridSpec(
                num_scalar_prefetch=0,
                grid=grid,
                in_specs=[
                    pl.BlockSpec((tm, tk), lambda i, j, k: (i, k)),
                    pl.BlockSpec((tk, tn), lambda i, j, k: (k, j)),
                    pl.BlockSpec((1, tn), lambda i, j, k: (0, j)),
                ],
                out_specs=pl.BlockSpec((tm, tn), lambda i, j, k: (i, j)),
                scratch_shapes=[pltpu.VMEM((tm, tn), jnp.float32)],
            ),
            compiler_params=pltpu.CompilerParams(
                dimension_semantics=("parallel", "parallel", "arbitrary"),
                vmem_limit_bytes=vmem_limit),
            cost_estimate=cost,
        )(x2d, w_t, b_row)

    out = out2d[:m, :n_out]
    if post_softmax:
        out = jax.nn.softmax(out, axis=-1)
    out = out.reshape(*lead_shape, n_out)
    if split_out > 1:
        assert n_out % split_out == 0
        return tuple(jnp.split(out, split_out, axis=-1))
    return out


# ----------------------------------------------------------------------------
# Public API
# ----------------------------------------------------------------------------
def pallas_linear(x, weight, bias=None, *, activation="linear", split_out=1,
                  force_tiled=False, precision=None):
    """Functional forward of fuzzytorch Linear.

    x:      (b, ..., t) with t == input_dims
    weight: (output_dims * split_out, input_dims)   (PyTorch nn.Linear layout)
    bias:   (output_dims * split_out,) or None
    precision: optional lax.Precision for the MXU dot (e.g. HIGHEST for strict
               f32 accumulation; default uses the backend's default precision).

    NOTE: this pads/transposes the weight per call (it constant-folds under jit
    when the weight is a constant); use make_linear()/prepare_linear_params()
    to hoist that work to parameter-setup time.
    """
    prepared = prepare_linear_params(weight, bias)
    return _linear_forward(x, prepared, activation=activation,
                           split_out=split_out, force_tiled=force_tiled,
                           precision=precision)


def make_linear(weight, bias=None, *, activation="linear", split_out=1,
                precision=None):
    """Setup-time variant: weight transpose/padding happens once, not per call."""
    prepared = prepare_linear_params(weight, bias)

    def apply(x, *, force_tiled=False):
        return _linear_forward(x, prepared, activation=activation,
                               split_out=split_out, force_tiled=force_tiled,
                               precision=precision)
    return apply


def init_linear_params(key, input_dims, output_dims, split_out=1,
                       bias_value=None, dtype=jnp.float32):
    """Deterministic init mimicking nn.Linear.reset_parameters (uniform ±1/sqrt(fan_in))."""
    n_out = output_dims * split_out
    kw, kb = jax.random.split(key)
    bound = 1.0 / math.sqrt(input_dims)
    weight = jax.random.uniform(kw, (n_out, input_dims), dtype=dtype,
                                minval=-bound, maxval=bound)
    if bias_value is not None:
        bias = jnp.full((n_out,), bias_value, dtype=dtype)
    else:
        bias = jax.random.uniform(kb, (n_out,), dtype=dtype,
                                  minval=-bound, maxval=bound)
    return weight, bias


if __name__ == "__main__":
    key = jax.random.PRNGKey(0)
    k_x, k_p1, k_p2, k_p3, k_p4, k_x2 = jax.random.split(key, 6)

    batch, seq, input_dims, output_dims = 2, 8, 32, 64
    x = jax.random.normal(k_x, (batch, seq, input_dims), dtype=jnp.float32)

    # 1) plain linear (weight-resident path)
    w1, b1 = init_linear_params(k_p1, input_dims, output_dims)
    y1 = jax.block_until_ready(pallas_linear(x, w1, b1, activation="linear"))
    ref1 = x @ w1.T + b1
    assert y1.shape == (batch, seq, output_dims)
    assert jnp.allclose(y1, ref1, atol=2e-5, rtol=2e-5)

    # 2) relu + split_out=2 via the setup-time (prepared-weight) API
    w2, b2 = init_linear_params(k_p2, input_dims, output_dims, split_out=2)
    lin2 = make_linear(w2, b2, activation="relu", split_out=2)
    outs = jax.block_until_ready(lin2(x))
    ref2 = jnp.split(jnp.maximum(x @ w2.T + b2, 0.0), 2, axis=-1)
    assert len(outs) == 2
    for got, ref in zip(outs, ref2):
        assert got.shape == (batch, seq, output_dims)
        assert jnp.allclose(got, ref, atol=2e-5, rtol=2e-5)

    # 3) softmax over a non-128-multiple output dim (exercises lane masking)
    w3, b3 = init_linear_params(k_p3, input_dims, 48)
    y3 = jax.block_until_ready(pallas_linear(x, w3, b3, activation="softmax"))
    ref3 = jax.nn.softmax(x @ w3.T + b3, axis=-1)
    assert jnp.allclose(y3, ref3, atol=2e-5, rtol=2e-5)

    # 4) force the tiled (M, N, K) path with a multi-step K reduction
    k_big, n_big = 640, 192
    x4 = jax.random.normal(k_x2, (batch, seq, k_big), dtype=jnp.float32)
    w4, b4 = init_linear_params(k_p4, k_big, n_big)
    y4 = jax.block_until_ready(
        pallas_linear(x4, w4, b4, activation="relu", force_tiled=True))
    ref4 = jnp.maximum(x4 @ w4.T + b4, 0.0)
    assert y4.shape == (batch, seq, n_big)
    assert jnp.allclose(y4, ref4, atol=1e-4, rtol=1e-4)

    print("KERNEL_OK")
</pallas_src>

<mosaic_0001>
module attributes {stable_mosaic.version = 11 : i64} {
  func.func @_linear_resident_kernel(%arg0: i32, %arg1: memref<16x128xf32, #tpu.memory_space<vmem>>, %arg2: memref<128x128xf32, #tpu.memory_space<vmem>>, %arg3: memref<1x128xf32, #tpu.memory_space<vmem>>, %arg4: memref<16x128xf32, #tpu.memory_space<vmem>>) attributes {dimension_semantics = [#tpu.dimension_semantics<parallel>], iteration_bounds = array<i64: 1>, scalar_prefetch = 0 : i64, scratch_operands = 0 : i64, tpu.core_type = #tpu.core_type<tc>, window_params = [{transform_indices = @transform_0, window_bounds = array<i64: 16, 128>}, {pipeline_mode = #tpu.pipeline_mode<synchronous>, transform_indices = @transform_1, window_bounds = array<i64: 128, 128>}, {pipeline_mode = #tpu.pipeline_mode<synchronous>, transform_indices = @transform_2, window_bounds = array<i64: 1, 128>}, {transform_indices = @transform_3, window_bounds = array<i64: 16, 128>}]} {
    %c0 = arith.constant 0 : index
    %c0_0 = arith.constant 0 : index
    %0 = vector.load %arg1[%c0, %c0_0] : memref<16x128xf32, #tpu.memory_space<vmem>>, vector<16x128xf32>
    %c0_1 = arith.constant 0 : index
    %c0_2 = arith.constant 0 : index
    %1 = vector.load %arg2[%c0_1, %c0_2] : memref<128x128xf32, #tpu.memory_space<vmem>>, vector<128x128xf32>
    %cst = arith.constant dense<0.000000e+00> : vector<16x128xf32>
    %2 = tpu.matmul %0, %1, %cst {dimension_numbers = #tpu.dot_dimension_numbers<[1], [0], [0], [1], [0, 0, 1, 1], [], []>} : vector<16x128xf32>, vector<128x128xf32>, vector<16x128xf32> -> vector<16x128xf32>
    %c0_3 = arith.constant 0 : index
    %c0_4 = arith.constant 0 : index
    %3 = vector.load %arg3[%c0_3, %c0_4] : memref<1x128xf32, #tpu.memory_space<vmem>>, vector<1x128xf32>
    %4 = vector.broadcast %3 : vector<1x128xf32> to vector<16x128xf32>
    %5 = arith.addf %2, %4 : vector<16x128xf32>
    %c0_5 = arith.constant 0 : index
    %c0_6 = arith.constant 0 : index
    %6 = vector.load %arg4[%c0_5, %c0_6] : memref<16x128xf32, #tpu.memory_space<vmem>>, vector<16x128xf32>
    tpu.vector_store %arg4[%c0_5, %c0_6], %5 {strides = array<i32>} : memref<16x128xf32, #tpu.memory_space<vmem>>, vector<16x128xf32>,
    return
  }
  func.func @transform_0(%arg0: i32) -> (i32, i32) {
    %c0_i32 = arith.constant 0 : i32
    %c0_i32_0 = arith.constant 0 : i32
    return %arg0, %c0_i32 : i32, i32
  }
  func.func @transform_1(%arg0: i32) -> (i32, i32) {
    %c0_i32 = arith.constant 0 : i32
    %c0_i32_0 = arith.constant 0 : i32
    %c0_i32_1 = arith.constant 0 : i32
    return %c0_i32, %c0_i32_0 : i32, i32
  }
  func.func @transform_2(%arg0: i32) -> (i32, i32) {
    %c0_i32 = arith.constant 0 : i32
    %c0_i32_0 = arith.constant 0 : i32
    %c0_i32_1 = arith.constant 0 : i32
    return %c0_i32, %c0_i32_0 : i32, i32
  }
  func.func @transform_3(%arg0: i32) -> (i32, i32) {
    %c0_i32 = arith.constant 0 : i32
    %c0_i32_0 = arith.constant 0 : i32
    return %arg0, %c0_i32 : i32, i32
  }
}

</mosaic_0001>

<bundles_post_ra>
// kernel: tpu_custom_call.1
= control target key start
LH: loop header
LB: loop body
LE: loop exit
PB: predicated region body
PF: predicated region fallthrough
CT: control target
= control target key end

     0   :  { %8 = vsyncpa [#allocation3], 0  ;;  %s399_s0 = inlined_call_operand.hbm [shape: f32[16,128], index: 0, kind: input, shape index: {}]   ;;  %s400_s1 = inlined_call_operand.hbm [shape: f32[128,128], index: 1, kind: input, shape index: {}]   ;;  %s401_s2 = inlined_call_operand.vmem [shape: f32[1,128], index: 2, kind: input, shape index: {}]   ;;  %s402_s3 = inlined_call_operand.hbm [shape: f32[16,128], index: 3, kind: output, shape index: {}]  }
   0x1   :  { %9 = vsyncpa [#allocation6], 0 }
   0x2   :  { %10 = vsyncpa [#allocation4], 0  ;;  %s326_s12 = smov [#allocation2]   ;;  %s254_s16 = scalar_lea.hbm %s399_s0, 256 }
   0x3   :  { %s16_s13 = sshll.u32 %s326_s12, 4  ;;  %p255_p0 = scmp.ne.s32.totalorder %s399_s0, %s254_s16  ;;  %s17_s13 = int_to_ptr.vmem [resolvable:$true] %s16_s13 }
   0x4   :  { %p258_p1 = scmp.lt.u32.totalorder %s254_s16, %s399_s0 }
   0x6   :  { %p260_p2 = pnand %p258_p1, %p255_p0 }
   0x8   :  { %263 = shalt.err (!%p260_p2)
}
   0x9   :  { %s264_s21 = scalar_lea.vmem %s17_s13, 256  ;;  %p269_p4 = scmp.lt.s32.totalorder %s17_s13, %s17_s13 }
   0xa   :  { %p265_p3 = scmp.ne.s32.totalorder %s17_s13, %s264_s21  ;;  %p270_p5 = scmp.lt.s32.totalorder %s264_s21, %s264_s21 }
   0xc   :  { %p271_p6 = por %p270_p5, %p269_p4 }
   0xe   :  { %p272_p7 = pnand %p271_p6, %p265_p3 }
  0x10   :  { %275 = shalt.err (!%p272_p7)
}
  0x11   :  { %s327_s22 = smov 128   ;;  %s328_s23 = smov 8  }
  0x12   :  { %22 = dma.hbm_to_vmem [thread:$0]  %s399_s0, 256, %s17_s13, [#allocation3], %s327_s22, %s327_s22, %s328_s23  }
  0x13   :  { %s329_s26 = smov [#allocation5]   ;;  %s276_s30 = scalar_lea.hbm %s400_s1, 2048 }
  0x14   :  { %s28_s27 = sshll.u32 %s329_s26, 4  ;;  %p277_p8 = scmp.ne.s32.totalorder %s400_s1, %s276_s30  ;;  %s29_s27 = int_to_ptr.vmem [resolvable:$true] %s28_s27 }
  0x15   :  { %p280_p9 = scmp.lt.u32.totalorder %s276_s30, %s400_s1 }
  0x17   :  { %p282_p10 = pnand %p280_p9, %p277_p8 }
  0x19   :  { %285 = shalt.err (!%p282_p10)
}
  0x1a   :  { %s286_s8 = scalar_lea.vmem %s29_s27, 2048  ;;  %p291_p12 = scmp.lt.s32.totalorder %s29_s27, %s29_s27 }
  0x1b   :  { %p287_p11 = scmp.ne.s32.totalorder %s29_s27, %s286_s8  ;;  %p292_p13 = scmp.lt.s32.totalorder %s286_s8, %s286_s8 }
  0x1d   :  { %p293_p0 = por %p292_p13, %p291_p12 }
  0x1f   :  { %p294_p1 = pnand %p293_p0, %p287_p11 }
  0x21   :  { %297 = shalt.err (!%p294_p1)
}
  0x22   :  { %34 = dma.hbm_to_vmem [thread:$0]  %s400_s1, 2048, %s29_s27, [#allocation6], %s327_s22, %s327_s22, %s328_s23  }
  0x23   :  { %320 = dma.done.wait [#allocation3], 256  }
  0x24   :  { %321 = vsyncadd [#allocation3], 4294967040 }
  0x25   :  { %322 = dma.done.wait [#allocation6], 2048  }
  0x26   :  { %323 = vsyncadd [#allocation6], 4294965248  ;;  %v45_v0 = vld [vmem:[#allocation5] sm:$0xff]  ;;  %v46_v1 = vld [vmem:[#allocation5 + $0x8] sm:$0xff]  ;;  %s330_s11 = smov [#allocation7]  }
  0x27   :  { %v47_v2 = vld [vmem:[#allocation5 + $0x10] sm:$0xff]  ;;  %v217_v3 = vpack.c.bf16 %v46_v1, %v45_v0  ;;  %v48_v4 = vld [vmem:[#allocation5 + $0x18] sm:$0xff]  ;;  %v49_v6 = vld [vmem:[#allocation5 + $0x20] sm:$0xff]  ;;  %s150_s12 = sshll.u32 %s330_s11, 4  ;;  %s151_s12 = int_to_ptr.vmem [resolvable:$true] %s150_s12 }
  0x28   :  { %v221_v5 = vpack.c.bf16 %v48_v4, %v47_v2  ;;  %v50_v7 = vld [vmem:[#allocation5 + $0x28] sm:$0xff]  ;;  %v43_v9 = vld [vmem:[#allocation2] sm:$0xff]  ;;  %v52_v11 = vld [vmem:[#allocation5 + $0x38] sm:$0xff]  ;;  %s298_s13 = scalar_lea.vmem %s151_s12, 256  ;;  %p303_p3 = scmp.lt.s32.totalorder %s151_s12, %s151_s12 }
  0x29   :  { %218 = vmatprep.subr.bf16.mxu0 %v217_v3  ;;  %v225_v8 = vpack.c.bf16 %v50_v7, %v49_v6  ;;  %v51_v10 = vld [vmem:[#allocation5 + $0x30] sm:$0xff]  ;;  %214 = vmatprep.mubr.f32.mxu0 %v43_v9  ;;  %v53_v13 = vld [vmem:[#allocation5 + $0x40] sm:$0xff]  ;;  %v54_v14 = vld [vmem:[#allocation5 + $0x48] sm:$0xff]  ;;  %p299_p2 = scmp.ne.s32.totalorder %s151_s12, %s298_s13  ;;  %p304_p4 = scmp.lt.s32.totalorder %s298_s13, %s298_s13 }
  0x2a   :  { %220 = vmatpush3.bf16.msra.mxu0 %v217_v3  ;;  %v229_v12 = vpack.c.bf16 %v52_v11, %v51_v10  ;;  %v233_v15 = vpack.c.bf16 %v54_v14, %v53_v13  ;;  %v55_v16 = vld [vmem:[#allocation5 + $0x50] sm:$0xff]  ;;  %v56_v17 = vld [vmem:[#allocation5 + $0x58] sm:$0xff]  ;;  %v57_v19 = vld [vmem:[#allocation5 + $0x60] sm:$0xff] }
  0x2b   :  { %222 = vmatprep.subr.bf16.mxu0 %v221_v5  ;;  %v237_v18 = vpack.c.bf16 %v56_v17, %v55_v16  ;;  %v58_v20 = vld [vmem:[#allocation5 + $0x68] sm:$0xff]  ;;  %v59_v22 = vld [vmem:[#allocation5 + $0x70] sm:$0xff]  ;;  %v60_v23 = vld [vmem:[#allocation5 + $0x78] sm:$0xff]  ;;  %p305_p5 = por %p304_p4, %p303_p3 }
  0x2c   :  { %v241_v21 = vpack.c.bf16 %v58_v20, %v57_v19  ;;  %v245_v24 = vpack.c.bf16 %v60_v23, %v59_v22  ;;  %v44_v25 = vld [vmem:[#allocation2 + $0x8] sm:$0xff]  ;;  %v163_v26 = vld [vmem:[%s401_s2] ss:$0 sm:$0xff] }
  0x2d   :  { %p306_p6 = pnand %p305_p5, %p299_p2 }
  0x2e   :  { %224 = vmatpush3.bf16.msra.mxu0 %v221_v5 }
  0x2f   :  { %226 = vmatprep.subr.bf16.mxu0 %v225_v8 }
  0x32   :  { %228 = vmatpush3.bf16.msra.mxu0 %v225_v8 }
  0x33   :  { %230 = vmatprep.subr.bf16.mxu0 %v229_v12 }
  0x36   :  { %232 = vmatpush3.bf16.msra.mxu0 %v229_v12 }
  0x37   :  { %234 = vmatprep.subr.bf16.mxu0 %v233_v15 }
  0x3a   :  { %236 = vmatpush3.bf16.msra.mxu0 %v233_v15 }
  0x3b   :  { %238 = vmatprep.subr.bf16.mxu0 %v237_v18 }
  0x3e   :  { %240 = vmatpush3.bf16.msra.mxu0 %v237_v18 }
  0x3f   :  { %242 = vmatprep.subr.bf16.mxu0 %v241_v21 }
  0x42   :  { %244 = vmatpush3.bf16.msra.mxu0 %v241_v21 }
  0x43   :  { %246 = vmatprep.subr.bf16.mxu0 %v245_v24 }
  0x46   :  { %248 = vmatpush3.bf16.msra.mxu0 %v245_v24 }
  0x49   :  { %215 = vmatmul.mubr.f32.vlgmr.msra.gmra.mrb[0].mxu0 %v44_v25 }
 0x11c   :  { %v216_v27 = vpop.f32.mrb[0].mxu0 }
 0x11d   :  { %v140_v28 = vadd.f32 %v216_v27, %v163_v26  ;;  %v134_v29 = vpop.f32.mrb[1].mxu0 }
 0x11e   :  { %v135_v30 = vadd.f32 %v163_v26, %v134_v29 }
 0x11f   :  { %144 = vst [vmem:[#allocation7 + $0x8] sm:$0xff] %v140_v28 }
 0x120   :  { %143 = vst [vmem:[#allocation7] sm:$0xff] %v135_v30 }
 0x121   :  { %309 = shalt.err (!%p306_p6)
}
 0x122   :  { %s310_s2 = scalar_lea.hbm %s402_s3, 256 }
 0x123   :  { %p311_p7 = scmp.ne.s32.totalorder %s402_s3, %s310_s2  ;;  %p314_p8 = scmp.lt.u32.totalorder %s310_s2, %s402_s3 }
 0x125   :  { %p316_p9 = pnand %p314_p8, %p311_p7 }
 0x127   :  { %319 = shalt.err (!%p316_p9)
}
 0x128   :  { %156 = dma.vmem_to_hbm [thread:$0]  %s151_s12, 256, %s402_s3, [#allocation4], %s327_s22, %s327_s22, %s328_s23  }
 0x129   :  { %324 = dma.done.wait [#allocation4], 256  }
 0x12a   :  { %325 = vsyncadd [#allocation4], 4294967040 }
 0x12b   :  { %160 = vsyncpa [#allocation3], 1 }
 0x12c   :  { %161 = vsyncpa [#allocation6], 1 }
 0x12d   :  { %162 = vsyncpa [#allocation4], 1 }

</bundles_post_ra>
